<compile_context>
chip_gen: v6e
topology: v6e:2x2x1
jax: 0.10.0
libtpu: 0.0.40
codegen_flags: <defaults>
</compile_context>

<pallas_src>
import functools

import jax
import jax.numpy as jnp
from jax.experimental import pallas as pl
from jax.experimental.pallas import tpu as pltpu


# ---------------------------------------------------------------------------
# Kernels
# ---------------------------------------------------------------------------

def _fc_relu_resident_kernel(x_ref, w_ref, b_ref, o_ref):
    """Full-K contraction per grid step (tk == H): no k loop, no accumulator."""
    x = x_ref[...].astype(w_ref.dtype)          # cast to MXU dtype in VMEM
    y = jnp.dot(x, w_ref[...], preferred_element_type=jnp.float32)
    y = y + b_ref[...].astype(jnp.float32)
    o_ref[...] = jnp.maximum(y, 0.0).astype(o_ref.dtype)


def _fc_relu_acc_kernel(x_ref, w_ref, b_ref, o_ref, acc_ref):
    """K-tiled kernel with resident f32 accumulator (init/finalize via pl.when)."""
    k = pl.program_id(2)

    @pl.when(k == 0)
    def _init():
        acc_ref[...] = jnp.zeros_like(acc_ref)

    x = x_ref[...].astype(w_ref.dtype)
    acc_ref[...] += jnp.dot(x, w_ref[...], preferred_element_type=jnp.float32)

    # Bias + ReLU only once, in the finalize branch.
    @pl.when(k == pl.num_programs(2) - 1)
    def _finalize():
        y = acc_ref[...] + b_ref[...].astype(jnp.float32)
        o_ref[...] = jnp.maximum(y, 0.0).astype(o_ref.dtype)


# ---------------------------------------------------------------------------
# Tile / VMEM selection
# ---------------------------------------------------------------------------

def _vmem_budget_bytes():
    """Generation-aware VMEM cap (leaves headroom for Mosaic internal scratch)."""
    try:
        cap = pltpu.get_tpu_info().vmem_capacity_bytes
    except Exception:
        cap = 128 << 20
    if cap <= (64 << 20):          # v7x-class: 64 MiB physical per TensorCore
        return 48 << 20
    return 100 << 20               # v5e / v6e: 128 MiB physical


def _lane_candidates(dim):
    """Lane-axis tile candidates: biggest first, 256-aligned preferred (v6e/v7x MXU)."""
    cands = [t for t in (2048, 1024, 512, 256, 128) if dim % t == 0]
    return cands or [dim]          # full-dim block for small / odd hidden sizes


def _vmem_need(tm, tn, tk, x_isz, w_isz, out_isz, resident):
    need = (2 * tm * tk * x_isz        # x tiles (double-buffered)
            + 2 * tk * tn * w_isz      # W^T tiles
            + 2 * tn * 4               # bias tiles (kept f32)
            + 2 * tm * tn * out_isz)   # output tiles
    if not resident:
        need += tm * tn * 4            # f32 accumulator scratch
    return need


def _shrink_tm(tm):
    if tm <= 8:
        return None
    nt = max(8, (tm // 2) // 8 * 8)    # stay a multiple of 8 (f32 sublane)
    return nt if nt < tm else None


def _pick_tiles(M, H, x_isz, w_isz, out_isz, budget, tile_m, tile_n, tile_k):
    tn_list = [tile_n] if tile_n is not None else _lane_candidates(H)
    tm0 = tile_m if tile_m is not None else (M if M <= 1024 else 1024)

    # 1) Resident-K fast path (tk == H).
    if tile_k is None or tile_k == H:
        for tn in tn_list:
            tm = tm0
            while tm is not None:
                if _vmem_need(tm, tn, H, x_isz, w_isz, out_isz, True) <= budget:
                    return tm, tn, H, True
                tm = _shrink_tm(tm)

    # 2) K-tiled path: prefer the largest tk that divides H.
    tk_list = [tile_k] if tile_k is not None else _lane_candidates(H)
    for tk in tk_list:
        for tn in tn_list:
            tm = tm0
            while tm is not None:
                if _vmem_need(tm, tn, tk, x_isz, w_isz, out_isz, False) <= budget:
                    return tm, tn, tk, False
                tm = _shrink_tm(tm)

    return 8, tn_list[-1], tk_list[-1], False     # last-resort minimum


# ---------------------------------------------------------------------------
# Public API
# ---------------------------------------------------------------------------

def prepare_fc_params(weight, bias, compute_dtype=jnp.bfloat16):
    """One-time parameter prep, hoisted out of the jitted per-call path.

    weight: [out_features, in_features]  (PyTorch nn.Linear convention)
    Returns (w_t [in, out] in compute_dtype, bias2d [1, H] f32).
    """
    w_t = jnp.asarray(weight).T.astype(compute_dtype)    # materialized once
    bias2d = jnp.asarray(bias, dtype=jnp.float32).reshape(1, -1)
    return w_t, bias2d


@functools.partial(
    jax.jit, static_argnames=("tile_m", "tile_n", "tile_k", "out_dtype"))
def fc_relu(x, w_t, bias2d, *, tile_m=None, tile_n=None, tile_k=None,
            out_dtype=None):
    """y = relu(x @ w_t + bias) along the last dim of x.

    x:      [..., H]
    w_t:    [H, H]  pre-transposed ([in, out]) and pre-cast weight
            (see prepare_fc_params).
    bias2d: [1, H]  f32 bias.
    out_dtype: output dtype (default: x.dtype). Pass jnp.bfloat16 to halve
               output VMEM / HBM traffic when downstream tolerates it.
    """
    orig_shape = x.shape
    H = orig_shape[-1]
    assert w_t.shape == (H, H), "w_t must be the pre-transposed [in, out] weight"
    out_dtype = jnp.dtype(out_dtype) if out_dtype is not None else x.dtype

    x2d = x.reshape(-1, H)
    M = x2d.shape[0]

    budget = _vmem_budget_bytes()
    tm, tn, tk, resident = _pick_tiles(
        M, H, x2d.dtype.itemsize, w_t.dtype.itemsize,
        jnp.dtype(out_dtype).itemsize, budget, tile_m, tile_n, tile_k)

    # K tail must never be silently dropped; N tiles stay lane-dense.
    assert H % tk == 0, f"tile_k={tk} must divide hidden={H}"
    assert H % tn == 0, f"tile_n={tn} must divide hidden={H}"

    # Partial M tail is safe: padded rows only touch masked output rows.
    m_blocks = pl.cdiv(M, tm)
    n_blocks = H // tn

    # v7x megacore: ensure at least one "parallel" axis has >= 2 blocks.
    if m_blocks == 1 and n_blocks == 1 and tm >= 16 and (tm // 2) % 8 == 0:
        tm //= 2
        m_blocks = pl.cdiv(M, tm)

    need = _vmem_need(tm, tn, tk, x2d.dtype.itemsize, w_t.dtype.itemsize,
                      jnp.dtype(out_dtype).itemsize, resident)
    vmem_limit = int(min(budget, max(2 * need, 32 << 20)))

    if resident:
        grid = (m_blocks, n_blocks)
        kernel = _fc_relu_resident_kernel
        in_specs = [
            pl.BlockSpec((tm, H), lambda i, j: (i, 0)),    # activations
            pl.BlockSpec((H, tn), lambda i, j: (0, j)),    # W^T columns
            pl.BlockSpec((1, tn), lambda i, j: (0, j)),    # bias
        ]
        out_specs = pl.BlockSpec((tm, tn), lambda i, j: (i, j))
        scratch = []
        dims = ("parallel", "parallel")
    else:
        grid = (m_blocks, n_blocks, H // tk)
        kernel = _fc_relu_acc_kernel
        in_specs = [
            pl.BlockSpec((tm, tk), lambda i, j, k: (i, k)),   # activations
            pl.BlockSpec((tk, tn), lambda i, j, k: (k, j)),   # W^T tiles
            pl.BlockSpec((1, tn), lambda i, j, k: (0, j)),    # bias
        ]
        out_specs = pl.BlockSpec((tm, tn), lambda i, j, k: (i, j))
        scratch = [pltpu.VMEM((tm, tn), jnp.float32)]
        dims = ("parallel", "parallel", "arbitrary")

    out = pl.pallas_call(
        kernel,
        out_shape=jax.ShapeDtypeStruct((M, H), out_dtype),
        grid_spec=pltpu.PrefetchScalarGridSpec(
            num_scalar_prefetch=0,
            grid=grid,
            in_specs=in_specs,
            out_specs=out_specs,
            scratch_shapes=scratch),
        compiler_params=pltpu.CompilerParams(
            dimension_semantics=dims,
            vmem_limit_bytes=vmem_limit),
    )(x2d, w_t, bias2d)

    return out.reshape(orig_shape[:-1] + (H,))


# ---------------------------------------------------------------------------
# Demo / correctness check
# ---------------------------------------------------------------------------

if __name__ == "__main__":
    # config.hidden_size = 32; input shaped [batch=2, seq=8, hidden=32]
    hidden_size = 32
    batch, seq = 2, 8

    key = jax.random.PRNGKey(0)
    kx, kw, kb = jax.random.split(key, 3)

    x = jax.random.normal(kx, (batch, seq, hidden_size), dtype=jnp.float32)
    # Deterministic synthetic params (shapes match nn.Linear(hidden, hidden)).
    bound = 1.0 / (hidden_size ** 0.5)
    weight = jax.random.uniform(
        kw, (hidden_size, hidden_size), minval=-bound, maxval=bound,
        dtype=jnp.float32)
    bias = jax.random.uniform(
        kb, (hidden_size,), minval=-bound, maxval=bound, dtype=jnp.float32)

    # Reference (same math as torch.nn.Linear + ReLU).
    y_ref = jnp.maximum(jnp.einsum("bsh,oh->bso", x, weight) + bias, 0.0)

    # Default path: bf16 MXU inputs, f32 accumulation (recommended on all gens).
    w_t_bf16, bias2d = prepare_fc_params(weight, bias, compute_dtype=jnp.bfloat16)
    y_bf16 = jax.block_until_ready(fc_relu(x, w_t_bf16, bias2d))
    assert y_bf16.shape == (batch, seq, hidden_size)
    assert jnp.allclose(y_bf16, y_ref, atol=3e-2, rtol=3e-2)

    # Full-f32 path for a tight numerical check.
    w_t_f32, _ = prepare_fc_params(weight, bias, compute_dtype=jnp.float32)
    y_f32 = jax.block_until_ready(fc_relu(x, w_t_f32, bias2d))
    assert jnp.allclose(y_f32, y_ref, atol=1e-5, rtol=1e-5)

    print("KERNEL_OK")
</pallas_src>

<mosaic_0001>
module attributes {stable_mosaic.version = 11 : i64} {
  func.func @_fc_relu_resident_kernel(%arg0: i32, %arg1: i32, %arg2: memref<8x32xf32, #tpu.memory_space<vmem>>, %arg3: memref<32x32xbf16, #tpu.memory_space<vmem>>, %arg4: memref<1x32xf32, #tpu.memory_space<vmem>>, %arg5: memref<8x32xf32, #tpu.memory_space<vmem>>) attributes {dimension_semantics = [#tpu.dimension_semantics<parallel>, #tpu.dimension_semantics<parallel>], iteration_bounds = array<i64: 2, 1>, scalar_prefetch = 0 : i64, scratch_operands = 0 : i64, tpu.core_type = #tpu.core_type<tc>, window_params = [{transform_indices = @transform_0, window_bounds = array<i64: 8, 32>}, {transform_indices = @transform_1, window_bounds = array<i64: 32, 32>}, {transform_indices = @transform_2, window_bounds = array<i64: 1, 32>}, {transform_indices = @transform_3, window_bounds = array<i64: 8, 32>}]} {
    %c0 = arith.constant 0 : index
    %c0_0 = arith.constant 0 : index
    %0 = vector.load %arg2[%c0, %c0_0] : memref<8x32xf32, #tpu.memory_space<vmem>>, vector<8x32xf32>
    %1 = arith.truncf %0 : vector<8x32xf32> to vector<8x32xbf16>
    %c0_1 = arith.constant 0 : index
    %c0_2 = arith.constant 0 : index
    %2 = vector.load %arg3[%c0_1, %c0_2] : memref<32x32xbf16, #tpu.memory_space<vmem>>, vector<32x32xbf16>
    %cst = arith.constant dense<0.000000e+00> : vector<8x32xf32>
    %3 = tpu.matmul %1, %2, %cst {dimension_numbers = #tpu.dot_dimension_numbers<[1], [0], [0], [1], [0, 0, 1, 1], [], []>} : vector<8x32xbf16>, vector<32x32xbf16>, vector<8x32xf32> -> vector<8x32xf32>
    %c0_3 = arith.constant 0 : index
    %c0_4 = arith.constant 0 : index
    %4 = vector.load %arg4[%c0_3, %c0_4] : memref<1x32xf32, #tpu.memory_space<vmem>>, vector<1x32xf32>
    %5 = vector.broadcast %4 : vector<1x32xf32> to vector<8x32xf32>
    %6 = arith.addf %3, %5 : vector<8x32xf32>
    %cst_5 = arith.constant 0.000000e+00 : f32
    %7 = vector.broadcast %cst_5 : f32 to vector<8x32xf32>
    %8 = arith.maximumf %6, %7 : vector<8x32xf32>
    %c0_6 = arith.constant 0 : index
    %c0_7 = arith.constant 0 : index
    %9 = vector.load %arg5[%c0_6, %c0_7] : memref<8x32xf32, #tpu.memory_space<vmem>>, vector<8x32xf32>
    tpu.vector_store %arg5[%c0_6, %c0_7], %8 {strides = array<i32>} : memref<8x32xf32, #tpu.memory_space<vmem>>, vector<8x32xf32>,
    return
  }
  func.func @transform_0(%arg0: i32, %arg1: i32) -> (i32, i32) {
    %c0_i32 = arith.constant 0 : i32
    %c0_i32_0 = arith.constant 0 : i32
    return %arg0, %c0_i32 : i32, i32
  }
  func.func @transform_1(%arg0: i32, %arg1: i32) -> (i32, i32) {
    %c0_i32 = arith.constant 0 : i32
    %c0_i32_0 = arith.constant 0 : i32
    return %c0_i32, %arg1 : i32, i32
  }
  func.func @transform_2(%arg0: i32, %arg1: i32) -> (i32, i32) {
    %c0_i32 = arith.constant 0 : i32
    %c0_i32_0 = arith.constant 0 : i32
    return %c0_i32, %arg1 : i32, i32
  }
  func.func @transform_3(%arg0: i32, %arg1: i32) -> (i32, i32) {
    %c0_i32 = arith.constant 0 : i32
    return %arg0, %arg1 : i32, i32
  }
}

</mosaic_0001>

<bundles_post_ra>
// kernel: fc_relu.1
= control target key start
LH: loop header
LB: loop body
LE: loop exit
PB: predicated region body
PF: predicated region fallthrough
CT: control target
= control target key end

     0   :  { %8 = vsyncpa [#allocation3], 0  ;;  %s885_s0 = inlined_call_operand.hbm [shape: f32[16,32], index: 0, kind: input, shape index: {}]   ;;  %s886_s1 = inlined_call_operand.hbm [shape: bf16[32,32], index: 1, kind: input, shape index: {}]   ;;  %s887_s2 = inlined_call_operand.vmem [shape: f32[1,32], index: 2, kind: input, shape index: {}]   ;;  %s888_s3 = inlined_call_operand.hbm [shape: f32[16,32], index: 3, kind: output, shape index: {}]  }
   0x1   :  { %10 = vsyncpa [#allocation3 + $0x1], 0 }
   0x2   :  { %11 = vsyncpa [#allocation6], 0 }
   0x3   :  { %12 = vsyncpa [#allocation4], 0 }
   0x4   :  { %14 = vsyncpa [#allocation4 + $0x1], 0  ;;  %s703_s12 = smov 0   ;;  %s705_s13 = smov 0  }
   0x5   :  { %s707_s14 = smov 0   ;;  %s709_s15 = smov 0  }
   0x6   :  { %s711_s16 = smov 0   ;;  %s713_s17 = smov 0  }
   0x7 LB: > { %s426_s18 = sadd.s32 4294967295, %s674_s17   ;;  %s427_s19 = sadd.s32 4294967294, %s674_s17   ;;  %s674_s17 = sphi %s713_s17, %s20_s17   ;;  %s670_s16 = sphi %s711_s16, %s906_s16   ;;  %s666_s15 = sphi %s709_s15, %s905_s15   ;;  %s662_s14 = sphi %s707_s14, %s904_s14   ;;  %s658_s13 = sphi %s705_s13, %s903_s13   ;;  %s654_s12 = sphi %s703_s12, %s902_s12  }
   0x8   : > { %p52_p0 = scmp.ne.s32.totalorder %s658_s13, %s654_s12  ;;  %p737_p1 = scmp.eq.s32.totalorder %s426_s18, 0 }
   0x9   : > { %p741_p2 = scmp.eq.s32.totalorder %s426_s18, 1  ;;  %p136_p3 = scmp.eq.s32.totalorder %s427_s19, 1 }
   0xa   : > { %p747_p4 = por %p737_p1, %p52_p0  ;;  %p428_p5 = scmp.ge.s32.totalorder %s674_s17, 1 }
   0xb   : > { %p752_p6 = por %p136_p3, %p52_p0  ;;  %p143_p7 = scmp.lt.s32.totalorder %s674_s17, 3 }
   0xc   : > { %s892_s22 = scalar_select %p747_p4, 1, 0 }
   0xd   : > { %s893_s23 = scalar_select %p752_p6, 1, 0 }
   0xe   : > { %p757_p8 = pnand %p428_p5, %p143_p7  ;;  %s676_s25 = smov [#allocation5]  }
   0xf   : > { %s157_s26 = sshll.u32 %s676_s25, 4  ;;  %s32_s28 = sadd.s32 1, %s670_s16  ;;  %s158_s26 = int_to_ptr.vmem [resolvable:$true] %s157_s26 }
  0x10   : > { %p465_p9 = pneg %p757_p8  ;;  %s547_s29 = scalar_lea.vmem %s158_s26, 256 }
  0x11   : > { %p548_p13 = scmp.ne.s32.totalorder %s158_s26, %s547_s29  ;;  %p555_p5 = scmp.lt.s32.totalorder %s158_s26, %s158_s26 }
  0x12   : > { %p766_p11 = pnand %p465_p9, %p737_p1  ;;  %p556_p7 = scmp.lt.s32.totalorder %s547_s29, %s547_s29 }
  0x14   : > { %p538_p12 = pneg %p766_p11  ;;  %p557_p6 = por %p556_p7, %p555_p5 }
  0x16   : > { %p550_p0 = pnand %p548_p13, %p538_p12 }
  0x18   : > { %p551_p3 = pneg %p550_p0 }
  0x1a   : > { %p558_p4 = pnand %p557_p6, %p551_p3 }
  0x1c   : > { %561 = shalt.err (!%p558_p4)
}
  0x1d   : > { %s677_s30 = smov 64   ;;  %s678_s4 = smov 4  }
  0x1e   : > { %468 = dma.hbm_to_vmem [thread:$0]  (!%p766_p11), %s886_s1, 256, %s158_s26, [#allocation6], %s677_s30, %s677_s30, %s678_s4  }
  0x1f   : > { %p34_p6 = scmp.ge.s32.totalorder %s32_s28, 2  ;;  %s39_s7 = sadd.s32 1, %s662_s14 }
  0x20   : > { %p46_p4 = scmp.ne.s32.totalorder %s662_s14, %s658_s13  ;;  %p47_p9 = scmp.eq.s32.totalorder %s674_s17, 0 }
  0x21   : > { %s908_s28 = smov (%p34_p6, %s32_s28), 0  ;;  %p478_p0 = scmp.lt.s32.totalorder %s674_s17, 2 }
  0x22   : > { %p784_p12 = por %p47_p9, %p46_p4  ;;  %p790_p13 = por %p741_p2, %p46_p4 }
  0x23   : > { %s36_s10 = ssub.s32 %s670_s16, %s908_s28  ;;  %s177_s11 = sand.u32 1, %s662_s14  }
  0x24   : > { %p37_p11 = scmp.eq.s32.totalorder %s36_s10, 0  ;;  %s432_s18 = sshll.u32 %s177_s11, 3 }
  0x25   : > { %s433_s25 = sshll.u32 %s670_s16, 7  ;;  %s181_s30 = scalar_lea.vmem [#allocation2], %s432_s18 }
  0x26   : > { %s799_s19 = scalar_select %p37_p11, %s662_s14, %s39_s7  }
  0x27   : > { %s186_s29 = scalar_lea.hbm %s885_s0, %s433_s25  ;;  %s188_s4 = sshll.u32 %s181_s30, 4  ;;  %s189_s4 = int_to_ptr.vmem [resolvable:$true] %s188_s4 }
  0x28   : > { %p807_p2 = pnand %p478_p0, %p784_p12  ;;  %s178_s5 = scalar_lea.sflag [#allocation3], %s177_s11 }
  0x29   : > { %s575_s6 = scalar_lea.vmem %s189_s4, 128  ;;  %s679_s7 = smov [#allocation2]  }
  0x2a   : > { %p564_p3 = pneg %p807_p2  ;;  %p576_p5 = scmp.ne.s32.totalorder %s189_s4, %s575_s6 }
  0x2b   : > { %s580_s10 = sshll.u32 %s679_s7, 4  ;;  %s581_s10 = int_to_ptr.vmem [resolvable:$false] %s580_s10 }
  0x2c   : > { %p578_p7 = pnand %p576_p5, %p564_p3  ;;  %s582_s25 = scalar_lea.vmem %s581_s10, 256 }
  0x2d   : > { %p583_p4 = scmp.lt.s32.totalorder %s189_s4, %s581_s10  ;;  %p584_p9 = scmp.lt.s32.totalorder %s582_s25, %s575_s6 }
  0x2e   : > { %p579_p6 = pneg %p578_p7 }
  0x2f   : > { %p585_p11 = por %p584_p9, %p583_p4 }
  0x31   : > { %p586_p10 = pnand %p585_p11, %p579_p6 }
  0x33   : > { %589 = shalt.err (!%p586_p10)
}
  0x34   : > { %472 = dma.hbm_to_vmem [thread:$0]  (!%p807_p2), %s186_s29, 128, %s189_s4, %s178_s5  }
  0x35   : > { %197 = sbr.rel (%p757_p8) target bundleno = 281 (0x119), region = 32  ;;  %s818_s8 = sand.u32 (!%p757_p8), 1, %s658_s13  }
  0x36   : > { %s435_s11 = sshll.u32 (!%p757_p8), %s818_s8, 3  ;;  %s200_s18 = scalar_lea.sflag (!%p757_p8), [#allocation3], %s818_s8 }
  0x37   : > { %s203_s26 = scalar_lea.vmem (!%p757_p8), [#allocation2], %s435_s11  ;;  %p899_p12 = scmp.ne.s32.totalorder (!%p757_p8), %s892_s22, 0 }
  0x3a   : > { %641 = dma.done.wait (%p899_p12), %s200_s18, 128  }
  0x3b   : > { %643 = vsyncadd (%p899_p12), %s200_s18, 4294967168 }
  0x3c   : > { %645 = dma.done.wait (%p737_p1), [#allocation6], 256  }
  0x3d   : > { %647 = vsyncadd (%p737_p1), [#allocation6], 4294967040  ;;  %v680_v0 = vmov 0.0   ;;  %vm681_vm0 = vmmov 0   ;;  %v534_v1 = vld [vmem:[#allocation5 + $0x8] sm:$0xff]   ;;  %v535_v2 = vld [vmem:[#allocation5] sm:$0xff]  }
  0x3e   : > { %449 = vmatprep.subr.bf16.mxu0 %v680_v0  ;;  %453 = vmatprep.mubr.msk.bf16.mxu0 %vm681_vm0, %v680_v0  ;;  %v237_v3 = vld [vmem:[%s203_s26] sm:$0xff]  ;;  %vm262_vm1 = vcmask 261120   ;;  %s443_s20 = sshll.u32 %s666_s15, 7  ;;  %s232_s27 = scalar_lea.vmem [#allocation7], %s435_s11 }
  0x3f   : > { %450 = vmatpush3.bf16.msra.mxu0 %v534_v1  ;;  %v238_v4 = vpack.c.bf16 %v237_v3, %v237_v3  ;;  %v438_v5 = vld [vmem:[%s887_s2] ss:$0 sm:$0xff]  ;;  %s323_s29 = sshll.u32 %s232_s27, 4  ;;  %s837_s21 = scalar_lea.hbm %s888_s3, %s443_s20  ;;  %s839_s29 = int_to_ptr.vmem [resolvable:$true] %s323_s29 }
  0x40   : > { %451 = vmatprep.subr.bf16.mxu0 %v680_v0  ;;  %s309_s5 = scalar_lea.sflag [#allocation4], %s818_s8  ;;  %s590_s15 = scalar_lea.vmem %s839_s29, 128 }
  0x41   : > { %p591_p1 = scmp.ne.s32.totalorder %s839_s29, %s590_s15  ;;  %s682_s6 = smov [#allocation7]  }
  0x42   : > { %s594_s7 = sshll.u32 %s682_s6, 4  ;;  %s595_s7 = int_to_ptr.vmem [resolvable:$false] %s594_s7 }
  0x43   : > { %452 = vmatpush3.bf16.msra.mxu0 %v535_v2  ;;  %p592_p8 = pnand %p591_p1, %p790_p13  ;;  %s596_s10 = scalar_lea.vmem %s595_s7, 256 }
  0x44   : > { %p597_p0 = scmp.lt.s32.totalorder %s839_s29, %s595_s7  ;;  %p598_p2 = scmp.lt.s32.totalorder %s596_s10, %s590_s15 }
  0x45   : > { %p593_p10 = pneg %p592_p8 }
  0x46   : > { %454 = vmatmul.mubr.msk.bf16.vlgmr.msra.gmra.mxu0 %vm262_vm1, %v238_v4  ;;  %p599_p3 = por %p598_p2, %p597_p0 }
  0x48   : > { %p600_p5 = pnand %p599_p3, %p593_p10 }
 0x106   : > { %v300_v6 = vpop.f32.mrf.mxu0 }
 0x107   : > { %v301_v7 = vadd.f32 %v438_v5, %v300_v6 }
 0x108   : > { %v455_v8 = vpop.f32.mrf.mxu0 }
 0x109   : > { %v306_v9 = vmax.f32 %v301_v7, 0.0 }
 0x10a   : > { %v303_v10 = vpop.f32.mrf.mxu0 }
 0x10b   : > { %307 = vst.msk [vmem:[%s232_s27] sm:$0xff] %vm262_vm1, %v306_v9 }
 0x10c   : > { %v456_v11 = vpop.f32.mrf.mxu0 }
 0x10d   : > { %603 = shalt.err (!%p600_p5)
}
 0x10e   : > { %s604_s25 = scalar_lea.hbm %s837_s21, 128  ;;  %s608_s18 = scalar_lea.hbm %s888_s3, 256 }
 0x10f   : > { %p605_p7 = scmp.ne.s32.totalorder %s837_s21, %s604_s25  ;;  %p609_p9 = scmp.lt.s32.totalorder %s837_s21, %s888_s3 }
 0x110   : > { %p610_p11 = scmp.lt.s32.totalorder %s608_s18, %s604_s25 }
 0x111   : > { %p606_p6 = pnand %p605_p7, %p790_p13 }
 0x112   : > { %p611_p12 = por %p610_p11, %p609_p9 }
 0x113   : > { %p607_p4 = pneg %p606_p6 }
 0x115   : > { %p612_p1 = pnand %p611_p12, %p607_p4 }
 0x117   : > { %615 = shalt.err (!%p612_p1)
}
 0x118   : > { %463 = dma.vmem_to_hbm [thread:$0]  (%p790_p13), %s839_s29, 128, %s837_s21, %s309_s5  }
 0x119 PF: > { %s335_s24 = sand.u32 1, %s654_s12   ;;  %p900_p8 = scmp.ne.s32.totalorder %s893_s23, 0 }
 0x11a   : > { %p901_p10 = scmp.ge.s32.totalorder %s674_s17, 2  ;;  %s336_s20 = scalar_lea.sflag [#allocation4], %s335_s24 }
 0x11c   : > { %p474_p0 = pnand %p901_p10, %p900_p8 }
 0x11e   : > { %p475_p2 = pneg %p474_p0 }
 0x120   : > { %649 = dma.done.wait (%p475_p2), %s336_s20, 128  }
 0x121   : > { %651 = vsyncadd (%p475_p2), %s336_s20, 4294967168  ;;  %s20_s17 = sadd.s32 1, %s674_s17   ;;  %s902_s12 = smov %s658_s13 }
 0x122   : > { %p17_p3 = scmp.ge.s32.totalorder %s20_s17, 4   ;;  %s903_s13 = smov %s662_s14 }
 0x123   : > { %s904_s14 = smov %s799_s19  ;;  %s905_s15 = smov %s670_s16 }
 0x124   : > { %s906_s16 = smov %s908_s28  ;;  %19 = sbr.rel (!%p17_p3) target bundleno = 7 (0x7), region = 85 }
 0x129   :  { %341 = vsyncpa [#allocation3], 1 }
 0x12a   :  { %343 = vsyncpa [#allocation3 + $0x1], 1 }
 0x12b   :  { %344 = vsyncpa [#allocation6], 1 }
 0x12c   :  { %345 = vsyncpa [#allocation4], 1 }
 0x12d   :  { %347 = vsyncpa [#allocation4 + $0x1], 1 }

</bundles_post_ra>
